<compile_context>
chip_gen: v6e
topology: v6e:2x2x1
jax: 0.10.0
libtpu: 0.0.40
codegen_flags: <defaults>
</compile_context>

<pallas_src>
import functools

import jax
import jax.numpy as jnp
import numpy as np
from jax import lax
from jax.experimental import pallas as pl
from jax.experimental.pallas import tpu as pltpu

K_FEAT = 16  # shared audio/visual feature channels


def _activate_ew(x, name):
    """Elementwise activations (softmax handled explicitly at call sites)."""
    if name == 'sigmoid':
        return jax.nn.sigmoid(x)
    elif name == 'relu':
        return jnp.maximum(x, 0.0)
    elif name == 'tanh':
        return jnp.tanh(x)
    elif name == 'abstanh':
        return jnp.abs(jnp.tanh(x))
    elif name == 'no':
        return x
    else:
        raise Exception('Unkown activation!')


def _activate(x, name, axis=1):
    # mirrors models.net_wrapper.activate (static string -> trace-time branch)
    if name == 'softmax':
        return jax.nn.softmax(x, axis=axis)
    return _activate_ew(x, name)


def _fold_8x128(x):
    """Fold a (rows, cols) f32 tile into an (8, 128) partial-sum tile using only
    VPU cross-vreg adds (no XLU reduce, better summation numerics).  The total
    jnp.sum of the result always equals jnp.sum(x)."""
    r, c = x.shape
    if r % 8 == 0 and c % 128 == 0:
        return x.reshape(r // 8, 8, c // 128, 128).sum(axis=(0, 2))
    return jnp.full((8, 128), jnp.sum(x) / 1024.0, jnp.float32)


# --------------------------------------------------------------------------
# Kernel 1: net_frame.forward_multiframe  (global pool over T*H*W + linear)
# Grid (N, S-tiles): N parallel, S reduction (pooled-sum accumulator in VMEM
# scratch, finalized with pl.when) so real video sizes fit v7x VMEM.
# --------------------------------------------------------------------------
def _frame_kernel(frames_ref, wf_ref, bf_ref, out_ref, acc_ref, *,
                  img_activation, s_total):
    s = pl.program_id(1)

    @pl.when(s == 0)
    def _init():
        acc_ref[...] = jnp.zeros_like(acc_ref)

    # frames_ref: (1, B, 3, ts); zero padding of the S axis does not change sums.
    acc_ref[...] += jnp.sum(frames_ref[0], axis=-1)          # (B, 3)

    @pl.when(s == pl.num_programs(1) - 1)
    def _finalize():
        pooled = acc_ref[...] * (1.0 / float(s_total))        # (B, 3) mean pool
        wf = wf_ref[...]                                      # (3, K)
        feat = jnp.sum(pooled[:, :, None] * wf[None, :, :], axis=1) + bf_ref[...]
        out_ref[...] = _activate(feat, img_activation, axis=1)[None]


def _run_frame(frames_flat, W_frame, b_frame, ctx):
    N, B, C, S = frames_flat.shape
    K = W_frame.shape[1]
    # lane-dense S tiles; pad with zeros (sum is unchanged, divide by true S)
    ts = min(8192, ((S + 127) // 128) * 128)
    S_pad = ((S + ts - 1) // ts) * ts
    if S_pad != S:
        frames_flat = jnp.pad(frames_flat,
                              ((0, 0), (0, 0), (0, 0), (0, S_pad - S)))
    n_st = S_pad // ts

    kernel = functools.partial(_frame_kernel,
                               img_activation=ctx['img_activation'], s_total=S)
    return pl.pallas_call(
        kernel,
        out_shape=jax.ShapeDtypeStruct((N, B, K), jnp.float32),
        grid=(N, n_st),
        in_specs=[
            pl.BlockSpec((1, B, C, ts), lambda n, s: (n, 0, 0, s)),
            pl.BlockSpec((C, K), lambda n, s: (0, 0)),
            pl.BlockSpec((1, K), lambda n, s: (0, 0)),
        ],
        out_specs=pl.BlockSpec((1, B, K), lambda n, s: (n, 0, 0)),
        scratch_shapes=[pltpu.VMEM((B, C), jnp.float32)],
        compiler_params=pltpu.CompilerParams(
            dimension_semantics=("parallel", "arbitrary")),
    )(frames_flat, W_frame, b_frame)


# --------------------------------------------------------------------------
# Kernel 2 (fused): preprocessing + net_sound + synthesizer + output activation
#                   + weighted-L1 crit, gridded over (batch, F-tile).
# Per grid step the kernel touches one (tf, T) spectrogram tile for every
# spectrogram-sized tensor; the K-channel audio feature is never materialized
# in HBM, and the K-contraction is strip-mined so accumulators stay in vregs.
# --------------------------------------------------------------------------
def _fused_kernel(mag_ref, mags_ref, ws_ref, bs_ref, ff_ref, a_ref, c_ref,
                  scale_ref, bias_ref, *out_refs,
                  N, B, K, row_strip, weighted_loss, binary_mask,
                  sound_activation, output_activation):
    if weighted_loss:
        mageps_ref, weight_ref, gtm_ref, pred_ref, loss_ref = out_refs
    else:
        mageps_ref, gtm_ref, pred_ref, loss_ref = out_refs
        weight_ref = None

    b = pl.program_id(0)
    tf, T = mag_ref.shape[1], mag_ref.shape[2]

    # ---- preprocessing: eps, loss weight, ground-truth masks -----------------
    mag = mag_ref[0] + 1e-10                      # (tf, T)
    mageps_ref[0] = mag

    if weighted_loss:
        w_full = jnp.clip(jnp.log1p(mag), 0.001, 10.0)
        weight_ref[0] = w_full

    mags = mags_ref[...]                          # (N, 1, tf, T)
    if binary_mask:
        gtm = (mags > 0.5 * mag[None, None]).astype(jnp.float32)
    else:
        inv_mag = 1.0 / mag                       # one divide, reused for all N
        gtm = jnp.clip(mags * inv_mag[None, None], 0.0, 5.0)
    gtm_ref[...] = gtm

    def act_out(y):
        if output_activation == 'softmax':
            # softmax over the singleton channel dim of (B,1,F,T) degenerates to 1
            return jnp.ones_like(y)
        return _activate_ew(y, output_activation)

    # ---- sound_activation == 'no': affine collapse (coefficients hoisted,
    #      synth scale/bias already folded into a/c in the wrapper) -------------
    if sound_activation == 'no':
        log_mag = jnp.log(mag)
        err_total = jnp.zeros_like(mag)
        for n in range(N):
            pred_n = act_out(a_ref[n * B + b] * log_mag + c_ref[n * B + b])
            pred_ref[n, 0] = pred_n
            d = jnp.abs(pred_n - gtm[n, 0])
            err_total = err_total + (d * w_full if weighted_loss else d)
        loss_ref[0, 0] = _fold_8x128(err_total)
        return

    # ---- generic / softmax sound_activation: strip-mined K-contraction -------
    scale = scale_ref[0, 0]
    bias = bias_ref[0, 0]
    wsv = [ws_ref[k] for k in range(K)]                         # hoisted SMEM reads
    bsv = [bs_ref[k] for k in range(K)]
    ffv = [[ff_ref[n * B + b, k] for k in range(K)] for n in range(N)]

    rs = row_strip
    n_strips = tf // rs

    def strip_body(i, err_part):
        off = pl.multiple_of(i * rs, rs)
        log_s = jnp.log(mageps_ref[0, pl.ds(off, rs), :])       # (rs, T)

        if sound_activation == 'softmax':
            # streaming two-pass softmax over K; (K, rs, T) never materialized.
            m = wsv[0] * log_s + bsv[0]
            for k in range(1, K):
                m = jnp.maximum(m, wsv[k] * log_s + bsv[k])
            denom = jnp.zeros_like(log_s)
            accs = [jnp.zeros_like(log_s) for _ in range(N)]
            for k in range(K):
                e_k = jnp.exp(wsv[k] * log_s + bsv[k] - m)
                denom = denom + e_k
                for n in range(N):
                    accs[n] = accs[n] + ffv[n][k] * e_k
            inv_d = 1.0 / denom
            logits = [acc * inv_d for acc in accs]
        else:
            accs = [jnp.zeros_like(log_s) for _ in range(N)]
            for k in range(K):
                feat_k = _activate_ew(wsv[k] * log_s + bsv[k], sound_activation)
                for n in range(N):
                    accs[n] = accs[n] + ffv[n][k] * feat_k
            logits = accs

        if weighted_loss:
            w_s = weight_ref[0, pl.ds(off, rs), :]
        err_s = jnp.zeros_like(log_s)
        for n in range(N):
            pred_n = act_out(scale * logits[n] + bias)
            pred_ref[n, 0, pl.ds(off, rs), :] = pred_n
            d = jnp.abs(pred_n - gtm_ref[n, 0, pl.ds(off, rs), :])
            err_s = err_s + (d * w_s if weighted_loss else d)
        return err_part + _fold_8x128(err_s)

    err_part = lax.fori_loop(0, n_strips, strip_body,
                             jnp.zeros((8, 128), jnp.float32))
    loss_ref[0, 0] = err_part


def _choose_f_tile(F, T, N, weighted_loss):
    """Largest F-tile (multiple of 8 dividing F) keeping the per-step block set
    around ~6 MiB: double-buffered that is <~12 MiB (+ a few MiB of in-kernel
    temps), inside v5e's 16 MiB scoped VMEM and well under v6e/v7x's 32 MiB,
    while keeping the DMA per step large enough to amortize the ~0.35 us fixed
    per-step overhead."""
    bytes_per_f_row = 4 * T * (2 + (1 if weighted_loss else 0) + 3 * N)
    budget = 6 * 1024 * 1024
    cands = [d for d in range(8, F + 1, 8) if F % d == 0]
    if not cands:
        return F                              # odd / tiny F: one full-F block
    fitting = [d for d in cands if d * bytes_per_f_row <= budget]
    return max(fitting) if fitting else min(cands)


def _choose_row_strip(tf):
    """Sublane strip size for the in-kernel K-contraction loop (keeps the N
    accumulators + feat_k register resident: ~20-25 live vregs at rs=32)."""
    for rs in (32, 16, 8):
        if tf % rs == 0:
            return rs
    return tf


def _run_fused(mag_mix, mags, ws, bs, ff_flat, a_coef, c_coef, scale, bias,
               ctx, *, N, K):
    B, F, T = mag_mix.shape
    weighted_loss = ctx['weighted_loss']
    tf = _choose_f_tile(F, T, N, weighted_loss)
    n_ft = F // tf
    # TODO(synk): if T is not a multiple of 128 (common STFT sizes), fold the
    # (tf, T) tiles into a lane-dense (tf*T/128, 128) presentation before storing
    # to avoid masked vst.msk partial stores.

    kernel = functools.partial(
        _fused_kernel, N=N, B=B, K=K, row_strip=_choose_row_strip(tf),
        weighted_loss=weighted_loss,
        binary_mask=ctx['binary_mask'],
        sound_activation=ctx['sound_activation'],
        output_activation=ctx['output_activation'])

    out_shapes = [jax.ShapeDtypeStruct((B, F, T), jnp.float32)]          # mag + eps
    out_specs = [pl.BlockSpec((1, tf, T), lambda b, f: (b, f, 0))]
    if weighted_loss:
        out_shapes.append(jax.ShapeDtypeStruct((B, F, T), jnp.float32))  # loss weight
        out_specs.append(pl.BlockSpec((1, tf, T), lambda b, f: (b, f, 0)))
    out_shapes += [
        jax.ShapeDtypeStruct((N, B, F, T), jnp.float32),                 # gt masks
        jax.ShapeDtypeStruct((N, B, F, T), jnp.float32),                 # pred masks
        jax.ShapeDtypeStruct((B, n_ft, 8, 128), jnp.float32),            # loss partials
    ]
    out_specs += [
        pl.BlockSpec((N, 1, tf, T), lambda b, f: (0, b, f, 0)),
        pl.BlockSpec((N, 1, tf, T), lambda b, f: (0, b, f, 0)),
        pl.BlockSpec((1, 1, 8, 128), lambda b, f: (b, f, 0, 0)),
    ]

    # VMEM limit derived from the real block set (double-buffer + temps), capped
    # well under v7x's 64 MiB physical / 32 MiB scoped.
    step_bytes = tf * T * 4 * (2 + (1 if weighted_loss else 0) + 3 * N)
    vmem_limit = int(min(30 * 1024 * 1024, max(16 * 1024 * 1024, 3 * step_bytes)))

    smem = pltpu.MemorySpace.SMEM
    outs = pl.pallas_call(
        kernel,
        out_shape=tuple(out_shapes),
        grid=(B, n_ft),
        in_specs=[
            pl.BlockSpec((1, tf, T), lambda b, f: (b, f, 0)),
            pl.BlockSpec((N, 1, tf, T), lambda b, f: (0, b, f, 0)),
            pl.BlockSpec(memory_space=smem),   # w_sound  (K,)
            pl.BlockSpec(memory_space=smem),   # b_sound  (K,)
            pl.BlockSpec(memory_space=smem),   # feat_frames (N*B, K)
            pl.BlockSpec(memory_space=smem),   # collapsed slope  (N*B,)
            pl.BlockSpec(memory_space=smem),   # collapsed offset (N*B,)
            pl.BlockSpec(memory_space=smem),   # synth scale (1,1)
            pl.BlockSpec(memory_space=smem),   # synth bias  (1,1)
        ],
        out_specs=tuple(out_specs),
        compiler_params=pltpu.CompilerParams(
            # no cross-step state anymore -> both axes megacore-shardable (v7x)
            dimension_semantics=("parallel", "parallel"),
            vmem_limit_bytes=vmem_limit),
    )(mag_mix, mags, ws, bs, ff_flat, a_coef, c_coef, scale, bias)

    if weighted_loss:
        mag_eps, weight, gt_masks, pred_masks, loss_part = outs
    else:
        mag_eps, gt_masks, pred_masks, loss_part = outs
        weight = None
    return mag_eps, weight, gt_masks, pred_masks, loss_part


# --------------------------------------------------------------------------
# NetWrapper._forward equivalent (pixelwise=False path)
# --------------------------------------------------------------------------
def net_wrapper_forward(params, batch_data, ctx, pixelwise=False):
    if pixelwise:
        # TODO(synk): _forward_pixelwise (adaptive_avg_pool1d / forward_pixelwise
        # synthesizer path) not implemented.
        raise NotImplementedError
    mag_mix = batch_data['mag_mix']      # (B, 1, F, T)
    mags = batch_data['mags']            # list of N, each (B, 1, F, T)
    frames = batch_data['frames']        # list of N, each (B, 3, Tf, Hf, Wf)

    N = ctx['num_mix']
    B, _, F, T = mag_mix.shape
    K = params['w_sound'].shape[0]

    # TODO(synk): ctx['log_freq'] warpgrid + F.grid_sample resampling has no clean
    # Pallas equivalent here; this path requires log_freq == False.
    assert not ctx['log_freq']

    mag_mix_sq = mag_mix[:, 0]                           # (B, F, T)
    mags_st = jnp.stack([m[:, 0] for m in mags])         # (N, B, F, T)

    # net_frame: pooled-linear visual features (tiny tensors), S-tiled kernel.
    frames_st = jnp.stack(frames)                        # (N, B, 3, Tf, Hf, Wf)
    frames_flat = frames_st.reshape(N, B, 3, -1)         # (N, B, 3, Tf*Hf*Wf)
    feat_frames = _run_frame(frames_flat, params['W_frame'], params['b_frame'], ctx)

    # Scalar operands for the fused kernel (all live in SMEM inside the kernel).
    ws = params['w_sound'].reshape(K)
    bs = params['b_sound'].reshape(K)
    ff_flat = feat_frames.reshape(N * B, K)
    scale = params['synth_scale'][0, 0]
    bias = params['synth_bias'][0, 0]
    # Hoisted affine collapse of net_sound + synthesizer + synth scale/bias (used
    # when sound_activation == 'no'):  pred_logit = a*log_mag + c.
    a_coef = scale * jnp.einsum('nk,k->n', ff_flat, ws)          # (N*B,)
    c_coef = scale * jnp.einsum('nk,k->n', ff_flat, bs) + bias   # (N*B,)

    mag_eps, weight, gt_masks_st, pred_masks_st, loss_part = _run_fused(
        mag_mix_sq, mags_st, ws, bs, ff_flat, a_coef, c_coef,
        params['synth_scale'], params['synth_bias'], ctx, N=N, K=K)

    # crit: weighted L1, summed over mixtures (no 1/N):
    #   err = sum_n mean_{B,1,F,T}( weight * |pred_n - gt_n| )
    err = (jnp.sum(loss_part) / (B * F * T)).reshape(1)

    if weight is None:
        weight = jnp.ones_like(mag_eps)

    outputs = {
        'pred_masks': [pred_masks_st[n][:, None] for n in range(N)],   # (B,1,F,T)
        'gt_masks': [gt_masks_st[n][:, None] for n in range(N)],
        'mag_mix': mag_eps[:, None],
        'mags': list(mags),
        'weight': weight[:, None],
    }
    return err, outputs


# --------------------------------------------------------------------------
# Pure-JAX reference (mirrors the PyTorch module) used for validation.
# --------------------------------------------------------------------------
def _reference_forward(params, batch_data, ctx):
    N = ctx['num_mix']
    mag_mix = batch_data['mag_mix'] + 1e-10                    # (B,1,F,T)
    mags = list(batch_data['mags'])
    B = mag_mix.shape[0]
    K = params['w_sound'].shape[0]

    if ctx['weighted_loss']:
        weight = jnp.clip(jnp.log1p(mag_mix), 0.001, 10.0)
    else:
        weight = jnp.ones_like(mag_mix)

    gt_masks = []
    for n in range(N):
        if ctx['binary_mask']:
            gt_masks.append((mags[n] > 0.5 * mag_mix).astype(jnp.float32))
        else:
            gt_masks.append(jnp.clip(mags[n] / mag_mix, 0.0, 5.0))

    log_mag = jnp.log(mag_mix)                                 # (B,1,F,T)
    ws = params['w_sound'].reshape(K)
    bs = params['b_sound'].reshape(K)
    feat_sound = ws[None, :, None, None] * log_mag + bs[None, :, None, None]
    feat_sound = _activate(feat_sound, ctx['sound_activation'], axis=1)   # (B,K,F,T)

    pred_masks = []
    for n in range(N):
        fr = batch_data['frames'][n].reshape(B, 3, -1)         # (B,3,S)
        pooled = jnp.mean(fr, axis=-1)                         # (B,3)
        ffeat = pooled @ params['W_frame'] + params['b_frame'] # (B,K)
        ffeat = _activate(ffeat, ctx['img_activation'], axis=1)
        logit = jnp.einsum('bk,bkft->bft', ffeat, feat_sound)[:, None]    # (B,1,F,T)
        y = params['synth_scale'][0, 0] * logit + params['synth_bias'][0, 0]
        if ctx['output_activation'] == 'softmax':
            pred = jnp.ones_like(y)
        else:
            pred = _activate_ew(y, ctx['output_activation'])
        pred_masks.append(pred)

    err = sum(jnp.mean(weight * jnp.abs(pred_masks[n] - gt_masks[n])) for n in range(N))
    return err.reshape(1), pred_masks, gt_masks, mag_mix, weight


if __name__ == "__main__":
    B, F, T = 2, 512, 128
    N = 2
    Tf, Hf, Wf = 2, 8, 8          # Tf*Hf*Wf = 128 (lane-dense after flatten)
    K = K_FEAT

    key = jax.random.PRNGKey(0)
    keys = jax.random.split(key, 8)

    # deterministic synthetic parameters for the injected sub-nets
    params = {
        'w_sound': 0.5 * jax.random.normal(keys[0], (K, 1, 1), jnp.float32),
        'b_sound': 0.1 * jax.random.normal(keys[1], (K, 1, 1), jnp.float32),
        'W_frame': 0.5 * jax.random.normal(keys[2], (3, K), jnp.float32),
        'b_frame': 0.1 * jax.random.normal(keys[3], (1, K), jnp.float32),
        'synth_scale': jnp.ones((1, 1), jnp.float32),
        'synth_bias': jnp.zeros((1, 1), jnp.float32),
    }

    mags = [jax.nn.softplus(jax.random.normal(keys[4 + n], (B, 1, F, T), jnp.float32))
            for n in range(N)]
    mag_mix = mags[0] + mags[1]
    frames = [jax.random.normal(keys[6 + n], (B, 3, Tf, Hf, Wf), jnp.float32)
              for n in range(N)]
    batch_data = {'mag_mix': mag_mix, 'mags': mags, 'frames': frames}

    configs = [
        dict(num_mix=N, log_freq=False, weighted_loss=True, binary_mask=False,
             sound_activation='no', img_activation='sigmoid',
             output_activation='sigmoid'),
        dict(num_mix=N, log_freq=False, weighted_loss=False, binary_mask=True,
             sound_activation='relu', img_activation='sigmoid',
             output_activation='sigmoid'),
        dict(num_mix=N, log_freq=False, weighted_loss=True, binary_mask=False,
             sound_activation='softmax', img_activation='softmax',
             output_activation='sigmoid'),
    ]

    for ctx in configs:
        err, outputs = net_wrapper_forward(params, batch_data, ctx)
        jax.block_until_ready(err)
        jax.block_until_ready(outputs['pred_masks'][0])
        jax.block_until_ready(outputs['gt_masks'][0])

        err_ref, pred_ref_l, gt_ref_l, mag_ref, w_ref = _reference_forward(
            params, batch_data, ctx)
        np.testing.assert_allclose(np.asarray(err), np.asarray(err_ref),
                                   rtol=2e-3, atol=2e-3)
        np.testing.assert_allclose(np.asarray(outputs['mag_mix']),
                                   np.asarray(mag_ref), rtol=1e-5, atol=1e-5)
        np.testing.assert_allclose(np.asarray(outputs['weight']),
                                   np.asarray(w_ref), rtol=1e-4, atol=1e-4)
        for n in range(N):
            np.testing.assert_allclose(np.asarray(outputs['pred_masks'][n]),
                                       np.asarray(pred_ref_l[n]),
                                       rtol=2e-3, atol=2e-3)
            np.testing.assert_allclose(np.asarray(outputs['gt_masks'][n]),
                                       np.asarray(gt_ref_l[n]),
                                       rtol=1e-4, atol=1e-4)

    print("KERNEL_OK")
</pallas_src>

<mosaic_0001>
module attributes {stable_mosaic.version = 11 : i64} {
  func.func @_frame_kernel(%arg0: i32, %arg1: i32, %arg2: memref<1x2x3x128xf32, #tpu.memory_space<vmem>>, %arg3: memref<3x16xf32, #tpu.memory_space<vmem>>, %arg4: memref<1x16xf32, #tpu.memory_space<vmem>>, %arg5: memref<1x2x16xf32, #tpu.memory_space<vmem>>, %arg6: memref<2x3xf32, #tpu.memory_space<vmem>>) attributes {dimension_semantics = [#tpu.dimension_semantics<parallel>, #tpu.dimension_semantics<arbitrary>], iteration_bounds = array<i64: 2, 1>, scalar_prefetch = 0 : i64, scratch_operands = 1 : i64, tpu.core_type = #tpu.core_type<tc>, window_params = [{transform_indices = @transform_0, window_bounds = array<i64: 1, 2, 3, 128>}, {pipeline_mode = #tpu.pipeline_mode<synchronous>, transform_indices = @transform_1, window_bounds = array<i64: 3, 16>}, {pipeline_mode = #tpu.pipeline_mode<synchronous>, transform_indices = @transform_2, window_bounds = array<i64: 1, 16>}, {transform_indices = @transform_3, window_bounds = array<i64: 1, 2, 16>}]} {
    %c0_i32 = arith.constant 0 : i32
    %0 = arith.cmpi eq, %arg1, %c0_i32 : i32
    %1 = arith.extui %0 : i1 to i32
    %c0_i32_0 = arith.constant 0 : i32
    %2 = arith.cmpi ne, %1, %c0_i32_0 : i32
    scf.if %2 {
      %cst_10 = arith.constant 0.000000e+00 : f32
      %12 = vector.broadcast %cst_10 : f32 to vector<2x3xf32>
      %c0_11 = arith.constant 0 : index
      %c0_12 = arith.constant 0 : index
      %13 = vector.load %arg6[%c0_11, %c0_12] : memref<2x3xf32, #tpu.memory_space<vmem>>, vector<2x3xf32>
      tpu.vector_store %arg6[%c0_11, %c0_12], %12 {strides = array<i32>} : memref<2x3xf32, #tpu.memory_space<vmem>>, vector<2x3xf32>,
    } else {
    }
    %c0 = arith.constant 0 : index
    %c0_1 = arith.constant 0 : index
    %3 = vector.load %arg6[%c0, %c0_1] : memref<2x3xf32, #tpu.memory_space<vmem>>, vector<2x3xf32>
    %c0_2 = arith.constant 0 : index
    %c0_3 = arith.constant 0 : index
    %c0_4 = arith.constant 0 : index
    %c0_5 = arith.constant 0 : index
    %4 = vector.load %arg2[%c0_2, %c0_3, %c0_4, %c0_5] : memref<1x2x3x128xf32, #tpu.memory_space<vmem>>, vector<1x2x3x128xf32>
    %5 = vector.shape_cast %4 : vector<1x2x3x128xf32> to vector<2x3x128xf32>
    %cst = arith.constant dense<0.000000e+00> : vector<2x3xf32>
    %6 = vector.multi_reduction <add>, %5, %cst [2] : vector<2x3x128xf32> to vector<2x3xf32>
    %7 = arith.addf %3, %6 : vector<2x3xf32>
    %c0_6 = arith.constant 0 : index
    %c0_7 = arith.constant 0 : index
    %8 = vector.load %arg6[%c0_6, %c0_7] : memref<2x3xf32, #tpu.memory_space<vmem>>, vector<2x3xf32>
    tpu.vector_store %arg6[%c0_6, %c0_7], %7 {strides = array<i32>} : memref<2x3xf32, #tpu.memory_space<vmem>>, vector<2x3xf32>,
    %c0_i32_8 = arith.constant 0 : i32
    %9 = arith.cmpi eq, %arg1, %c0_i32_8 : i32
    %10 = arith.extui %9 : i1 to i32
    %c0_i32_9 = arith.constant 0 : i32
    %11 = arith.cmpi ne, %10, %c0_i32_9 : i32
    scf.if %11 {
      %c0_10 = arith.constant 0 : index
      %c0_11 = arith.constant 0 : index
      %12 = vector.load %arg6[%c0_10, %c0_11] : memref<2x3xf32, #tpu.memory_space<vmem>>, vector<2x3xf32>
      %cst_12 = arith.constant 7.812500e-03 : f32
      %13 = vector.broadcast %cst_12 : f32 to vector<2x3xf32>
      %14 = arith.mulf %12, %13 : vector<2x3xf32>
      %c0_13 = arith.constant 0 : index
      %c0_14 = arith.constant 0 : index
      %15 = vector.load %arg3[%c0_13, %c0_14] : memref<3x16xf32, #tpu.memory_space<vmem>>, vector<3x16xf32>
      %16 = vector.shape_cast %14 : vector<2x3xf32> to vector<2x3x1xf32>
      %17 = vector.shape_cast %15 : vector<3x16xf32> to vector<1x3x16xf32>
      %18 = vector.broadcast %16 : vector<2x3x1xf32> to vector<2x3x16xf32>
      %19 = vector.broadcast %17 : vector<1x3x16xf32> to vector<2x3x16xf32>
      %20 = arith.mulf %18, %19 : vector<2x3x16xf32>
      %cst_15 = arith.constant dense<0.000000e+00> : vector<2x16xf32>
      %21 = vector.multi_reduction <add>, %20, %cst_15 [1] : vector<2x3x16xf32> to vector<2x16xf32>
      %c0_16 = arith.constant 0 : index
      %c0_17 = arith.constant 0 : index
      %22 = vector.load %arg4[%c0_16, %c0_17] : memref<1x16xf32, #tpu.memory_space<vmem>>, vector<1x16xf32>
      %23 = vector.broadcast %22 : vector<1x16xf32> to vector<2x16xf32>
      %24 = arith.addf %21, %23 : vector<2x16xf32>
      %25 = arith.negf %24 : vector<2x16xf32>
      %26 = math.exp %25 : vector<2x16xf32>
      %cst_18 = arith.constant 1.000000e+00 : f32
      %27 = vector.broadcast %cst_18 : f32 to vector<2x16xf32>
      %28 = arith.addf %27, %26 : vector<2x16xf32>
      %29 = arith.divf %27, %28 : vector<2x16xf32>
      %30 = vector.shape_cast %29 : vector<2x16xf32> to vector<1x2x16xf32>
      %c0_19 = arith.constant 0 : index
      %c0_20 = arith.constant 0 : index
      %c0_21 = arith.constant 0 : index
      %31 = vector.load %arg5[%c0_19, %c0_20, %c0_21] : memref<1x2x16xf32, #tpu.memory_space<vmem>>, vector<1x2x16xf32>
      tpu.vector_store %arg5[%c0_19, %c0_20, %c0_21], %30 {strides = array<i32>} : memref<1x2x16xf32, #tpu.memory_space<vmem>>, vector<1x2x16xf32>,
    } else {
    }
    return
  }
  func.func @transform_0(%arg0: i32, %arg1: i32) -> (i32, i32, i32, i32) {
    %c0_i32 = arith.constant 0 : i32
    %c0_i32_0 = arith.constant 0 : i32
    %c0_i32_1 = arith.constant 0 : i32
    return %arg0, %c0_i32, %c0_i32_0, %arg1 : i32, i32, i32, i32
  }
  func.func @transform_1(%arg0: i32, %arg1: i32) -> (i32, i32) {
    %c0_i32 = arith.constant 0 : i32
    %c0_i32_0 = arith.constant 0 : i32
    %c0_i32_1 = arith.constant 0 : i32
    return %c0_i32, %c0_i32_0 : i32, i32
  }
  func.func @transform_2(%arg0: i32, %arg1: i32) -> (i32, i32) {
    %c0_i32 = arith.constant 0 : i32
    %c0_i32_0 = arith.constant 0 : i32
    %c0_i32_1 = arith.constant 0 : i32
    return %c0_i32, %c0_i32_0 : i32, i32
  }
  func.func @transform_3(%arg0: i32, %arg1: i32) -> (i32, i32, i32) {
    %c0_i32 = arith.constant 0 : i32
    %c0_i32_0 = arith.constant 0 : i32
    %c0_i32_1 = arith.constant 0 : i32
    return %arg0, %c0_i32, %c0_i32_0 : i32, i32, i32
  }
}

</mosaic_0001>

<bundles_post_ra>
// kernel: tpu_custom_call.1
= control target key start
LH: loop header
LB: loop body
LE: loop exit
PB: predicated region body
PF: predicated region fallthrough
CT: control target
= control target key end

     0   :  { %8 = vsyncpa [#allocation4], 0  ;;  %s671_s0 = inlined_call_operand.vmem [shape: f32[2,2,3,128], index: 0, kind: input, shape index: {}]   ;;  %s672_s1 = inlined_call_operand.vmem [shape: f32[3,16], index: 1, kind: input, shape index: {}]   ;;  %s673_s2 = inlined_call_operand.vmem [shape: f32[1,16], index: 2, kind: input, shape index: {}]   ;;  %s674_s3 = inlined_call_operand.hbm [shape: f32[2,2,16], index: 3, kind: output, shape index: {}]  }
   0x1   :  { %10 = vsyncpa [#allocation4 + $0x1], 0  ;;  %s558_s12 = smov 0   ;;  %s560_s13 = smov 0  }
   0x2   :  { %s562_s14 = smov 0   ;;  %s564_s15 = smov 0  }
   0x3   :  { %s566_s16 = smov 0   ;;  %s568_s17 = smov 0  }
   0x4 LB: > { %s378_s18 = sadd.s32 4294967295, %s534_s17   ;;  %s379_s19 = sadd.s32 4294967294, %s534_s17   ;;  %s534_s17 = sphi %s568_s17, %s16_s17   ;;  %s530_s16 = sphi %s566_s16, %s681_s16   ;;  %s526_s15 = sphi %s564_s15, %s680_s15   ;;  %s522_s14 = sphi %s562_s14, %s679_s14   ;;  %s518_s13 = sphi %s560_s13, %s678_s13   ;;  %s514_s12 = sphi %s558_s12, %s677_s12  }
   0x5   : > { %s28_s20 = sadd.s32 1, %s530_s16  ;;  %s105_s21 = sadd.s32 1, %s522_s14 }
   0x6   : > { %p30_p0 = scmp.ge.s32.totalorder %s28_s20, 2  ;;  %p115_p1 = scmp.ne.s32.totalorder %s522_s14, %s518_s13 }
   0x7   : > { %p116_p2 = scmp.eq.s32.totalorder %s378_s18, 1  ;;  %p121_p3 = scmp.ne.s32.totalorder %s518_s13, %s514_s12 }
   0x8   : > { %s683_s20 = smov (%p30_p0, %s28_s20), 0  ;;  %p122_p5 = scmp.eq.s32.totalorder %s379_s19, 1 }
   0x9   : > { %p598_p4 = por %p116_p2, %p115_p1  ;;  %s102_s23 = ssub.s32 %s530_s16, %s683_s20 }
   0xa   : > { %p382_p6 = scmp.ge.s32.totalorder %s534_s17, 1  ;;  %p103_p7 = scmp.eq.s32.totalorder %s102_s23, 0 }
   0xb   : > { %p605_p8 = por %p122_p5, %p121_p3  ;;  %p157_p9 = scmp.lt.s32.totalorder %s534_s17, 3 }
   0xc   : > { %s611_s25 = scalar_select %p103_p7, %s522_s14, %s105_s21  }
   0xd   : > { %p158_p10 = pnand %p382_p6, %p157_p9 }
   0xe   : > { %p184_p11 = scmp.lt.s32.totalorder (!%p158_p10), %s526_s15, 1  ;;  %s181_s8 = sand.u32 (!%p158_p10), 1, %s518_s13  }
   0xf   : > { %161 = sbr.rel (%p158_p10) target bundleno = 367 (0x16f), region = 32  ;;  %s383_s9 = sshll.u32 (!%p158_p10), %s181_s8, 1 }
  0x10   : > { %s390_s10 = sshll.u32 (!%p158_p10), %s526_s15, 5  ;;  %s183_s11 = scalar_lea.vmem (!%p158_p10), [#allocation3], %s383_s9 }
  0x11   : > { %s305_s18 = sshll.u32 (!%p158_p10), %s183_s11, 4  ;;  %s630_s23 = scalar_lea.hbm (!%p158_p10), %s674_s3, %s390_s10  ;;  %s306_s18 = int_to_ptr.vmem [resolvable:$true] %s305_s18 }
  0x14   : > { %s185_s26 = scalar_select %p184_p11, %s526_s15, 1  ;;  %vm201_vm0 = vcmask 1042432   ;;  %vm196_vm1 = vcmask 17408   ;;  %v536_v4 = vmov 0.0   ;;  %v210_v5 = vlaneseq  ;;  %v231_v22 = vld [vmem:[%s672_s1] sm:$0x7] }
  0x15   : > { %197 = vst.msk [vmem:[#allocation2] sm:$0x3] %vm196_vm1, %v536_v4  ;;  %vm220_vm2 = vcmask 1041409   ;;  %vm248_vm3 = vcmask 124928   ;;  %v386_v37 = vld [vmem:[%s673_s2] ss:$0 sm:$0xff] }
  0x16   : > { %s393_s27 = sshll.u32 %s185_s26, 3  ;;  %v211_v6 = vand.u32 127, %v210_v5  ;;  %v213_v7 = vshrl.u32 %v210_v5, 7  ;;  %vm289_vm4 = vcmask 123904   ;;  %s292_s26 = scalar_lea.sflag [#allocation4], %s181_s8 }
  0x17   : > { %s191_s30 = scalar_lea.vmem %s671_s0, %s393_s27  ;;  %s458_s27 = scalar_lea.vmem %s306_s18, 32 }
  0x18   : > { %v199_v0 = vld [vmem:[%s191_s30] sm:$0x7]  ;;  %v200_v1 = vld [vmem:[%s191_s30 + $0x4] sm:$0x7]  ;;  %v214_v9 = vsub.s32 %v211_v6, %v213_v7  ;;  %v241_v16 = vsub.s32 1, %v213_v7  ;;  %v234_v20 = vsub.s32 0, %v213_v7  ;;  %p459_p12 = scmp.ne.s32.totalorder %s306_s18, %s458_s27 }
  0x19   : > { %v202_v2 = vsel %vm201_vm0, %v199_v0, 0.0  ;;  %v205_v3 = vsel %vm201_vm0, %v200_v1, 0.0  ;;  %s537_s15 = smov [#allocation3]  }
  0x1a   : > { %203 = vadd.xlane.f32.xlu0 %v202_v2  ;;  %p460_p13 = pnand %p459_p12, %p598_p4  ;;  %s462_s28 = sshll.u32 %s537_s15, 4  ;;  %s463_s28 = int_to_ptr.vmem [resolvable:$false] %s462_s28 }
  0x1b   : > { %s464_s29 = scalar_lea.vmem %s463_s28, 64  ;;  %p465_p1 = scmp.lt.s32.totalorder %s306_s18, %s463_s28 }
  0x1c   : > { %v198_v12 = vld [vmem:[#allocation2] sm:$0x3]  ;;  %p461_p0 = pneg %p460_p13  ;;  %p466_p2 = scmp.lt.s32.totalorder %s464_s29, %s458_s27 }
  0x1e   : > { %206 = vadd.xlane.f32.xlu0 %v205_v3  ;;  %p467_p3 = por %p466_p2, %p465_p1 }
  0x20   : > { %p468_p5 = pnand %p467_p3, %p461_p0 }
  0xa3   : > { %v204_v8 = vpop.xlane.xlu0 %203 }
  0xa4   : > { %v215_v11 = vrot.slane %v204_v8, %v214_v9 }
  0xa7   : > { %v207_v10 = vpop.xlane.xlu0 %206 }
  0xa8   : > { %v219_v13 = vrot.slane %v207_v10, %v214_v9 }
  0xaa   : > { %v221_v14 = vsel %vm220_vm2, %v219_v13, %v215_v11 }
  0xab   : > { %v223_v15 = vadd.f32 %v221_v14, %v198_v12 }
  0xad   : > { %225 = vst.msk [vmem:[#allocation2] sm:$0x3] %vm196_vm1, %v223_v15 }
  0xb4   : > { %v229_v17 = vld [vmem:[#allocation2] sm:$0x3] }
  0xb5   : > { %v230_v18 = vmul.f32 0.0078125, %v229_v17 }
  0xb7   : > { %v242_v19 = vrot.slane %v230_v18, %v241_v16  ;;  %v235_v21 = vrot.slane %v230_v18, %v234_v20 }
  0xb9   : > { %244 = vbcast.lane.b32.xlu1 %v242_v19, 256 }
  0xbd   : > { %237 = vbcast.lane.b32.xlu1 %v235_v21, 256 }
 0x12b   : > { %v245_v23 = vpop.permute.xlu1 %244 }
 0x12c   : > { %v247_v24 = vmul.f32 %v245_v23, %v231_v22 }
 0x12e   : > { %v256_v25 = vsel %vm248_vm3, %v247_v24, 0.0 }
 0x12f   : > { %v257_v26 = vrot.slane %v256_v25, 4  ;;  %v238_v27 = vpop.permute.xlu1 %237 }
 0x130   : > { %v246_v28 = vmul.f32 %v238_v27, %v231_v22 }
 0x131   : > { %v258_v29 = vadd.f32 %v257_v26, %v256_v25 }
 0x132   : > { %v249_v30 = vsel %vm248_vm3, %v246_v28, 0.0 }
 0x133   : > { %v259_v31 = vrot.slane %v258_v29, 2  ;;  %v250_v32 = vrot.slane %v249_v30, 4 }
 0x135   : > { %v260_v33 = vadd.f32 %v259_v31, %v258_v29  ;;  %v251_v34 = vadd.f32 %v250_v32, %v249_v30 }
 0x137   : > { %v261_v35 = vrot.slane %v260_v33, 1  ;;  %v252_v36 = vrot.slane %v251_v34, 2 }
 0x139   : > { %v262_v38 = vadd.f32 %v261_v35, %v260_v33  ;;  %v253_v39 = vadd.f32 %v252_v36, %v251_v34 }
 0x13b   : > { %v271_v40 = vadd.f32 %v386_v37, %v262_v38  ;;  %v254_v41 = vrot.slane %v253_v39, 1 }
 0x13d   : > { %v388_v42 = vmul.f32 -1.442695, %v271_v40  ;;  %v255_v43 = vadd.f32 %v254_v41, %v253_v39 }
 0x13f   : > { %450 = vpow2.f32 %v388_v42  ;;  %v270_v44 = vadd.f32 %v386_v37, %v255_v43 }
 0x141   : > { %v387_v45 = vmul.f32 -1.442695, %v270_v44 }
 0x143   : > { %452 = vpow2.f32 %v387_v45 }
 0x14c   : > { %v451_v46 = vpop.eup %450 }
 0x14d   : > { %v279_v47 = vadd.f32 1.0, %v451_v46 }
 0x14f   : > { %454 = vrcp.f32 %v279_v47 }
 0x150   : > { %v453_v48 = vpop.eup %452 }
 0x151   : > { %v278_v49 = vadd.f32 1.0, %v453_v48 }
 0x153   : > { %456 = vrcp.f32 %v278_v49 }
 0x15c   : > { %v455_v50 = vpop.eup %454 }
 0x15d   : > { %v286_v51 = vrot.slane %v455_v50, 7 }
 0x160   : > { %v457_v52 = vpop.eup %456 }
 0x161   : > { %v287_v53 = vsel %vm220_vm2, %v286_v51, %v457_v52 }
 0x162   : > { %290 = vst.msk [vmem:[%s183_s11] sm:$0x3] %vm289_vm4, %v287_v53 }
 0x163   : > { %471 = shalt.err (!%p468_p5)
}
 0x164   : > { %s472_s30 = scalar_lea.hbm %s630_s23, 32  ;;  %s476_s6 = scalar_lea.hbm %s674_s3, 64 }
 0x165   : > { %p473_p6 = scmp.ne.s32.totalorder %s630_s23, %s472_s30  ;;  %p477_p10 = scmp.lt.s32.totalorder %s630_s23, %s674_s3 }
 0x166   : > { %p478_p11 = scmp.lt.s32.totalorder %s476_s6, %s472_s30 }
 0x167   : > { %p474_p7 = pnand %p473_p6, %p598_p4 }
 0x168   : > { %p479_p12 = por %p478_p11, %p477_p10 }
 0x169   : > { %p475_p9 = pneg %p474_p7 }
 0x16b   : > { %p480_p13 = pnand %p479_p12, %p475_p9 }
 0x16d   : > { %483 = shalt.err (!%p480_p13)
}
 0x16e   : > { %394 = dma.vmem_to_hbm [thread:$0]  (%p598_p4), %s306_s18, 32, %s630_s23, %s292_s26  }
 0x16f PF: > { %p400_p0 = scmp.ge.s32.totalorder %s534_s17, 2  ;;  %s317_s9 = sand.u32 1, %s514_s12  }
 0x170   : > { %s318_s10 = scalar_lea.sflag [#allocation4], %s317_s9 }
 0x171   : > { %p397_p1 = pnand %p400_p0, %p605_p8 }
 0x173   : > { %p398_p2 = pneg %p397_p1 }
 0x175   : > { %509 = dma.done.wait (%p398_p2), %s318_s10, 32  }
 0x176   : > { %511 = vsyncadd (%p398_p2), %s318_s10, 4294967264  ;;  %s16_s17 = sadd.s32 1, %s534_s17   ;;  %s677_s12 = smov %s518_s13 }
 0x177   : > { %p13_p3 = scmp.ge.s32.totalorder %s16_s17, 4   ;;  %s678_s13 = smov %s522_s14 }
 0x178   : > { %s679_s14 = smov %s611_s25  ;;  %s680_s15 = smov %s530_s16 }
 0x179   : > { %s681_s16 = smov %s683_s20  ;;  %15 = sbr.rel (!%p13_p3) target bundleno = 4 (0x4), region = 75 }
 0x17e   :  { %323 = vsyncpa [#allocation4], 1 }
 0x17f   :  { %325 = vsyncpa [#allocation4 + $0x1], 1 }

</bundles_post_ra>
